<compile_context>
chip_gen: v7x
topology: tpu7x:2x2x1
jax: 0.10.0
libtpu: 0.0.40
codegen_flags: <defaults>
</compile_context>

<pallas_src>
import jax
import jax.numpy as jnp
from jax.experimental import pallas as pl
from jax.experimental.pallas import tpu as pltpu

FC_DIM = 64
OUT_DIM = 10


def _linear_kernel(x_ref, w_ref, o_ref):
    # Single-tile matmul on the MXU; accumulate in f32, cast to output dtype.
    o_ref[...] = jnp.dot(
        x_ref[...], w_ref[...], preferred_element_type=jnp.float32
    ).astype(o_ref.dtype)


def mlp_out_linear(x: jax.Array, w_t: jax.Array, *, block_b: int = 512) -> jax.Array:
    """x: [B, FC_DIM]; w_t: [FC_DIM, OUT_DIM] (pre-transposed nn.Linear weight)."""
    B, K = x.shape
    K2, N = w_t.shape
    assert K == K2 == FC_DIM and N == OUT_DIM

    # Batch tile: multiple of 8 (f32 sublane), capped at block_b.
    tb = min(block_b, max(B, 8))
    tb = ((tb + 7) // 8) * 8
    # Pad B up to a multiple of tb so every grid step is a full block.
    b_pad = pl.cdiv(B, tb) * tb
    x_p = x if b_pad == B else jnp.pad(x, ((0, b_pad - B), (0, 0)))

    itemsize = jnp.dtype(x.dtype).itemsize
    cost = pl.CostEstimate(
        flops=2 * b_pad * K * N,
        transcendentals=0,
        bytes_accessed=(b_pad * K + K * N + b_pad * N) * itemsize,
    )

    out = pl.pallas_call(
        _linear_kernel,
        out_shape=jax.ShapeDtypeStruct((b_pad, N), x.dtype),
        grid_spec=pl.GridSpec(
            grid=(b_pad // tb,),
            in_specs=[
                pl.BlockSpec((tb, K), lambda i: (i, 0)),   # streamed x tiles
                pl.BlockSpec((K, N), lambda i: (0, 0)),    # weight stays resident
            ],
            out_specs=pl.BlockSpec((tb, N), lambda i: (i, 0)),
        ),
        compiler_params=pltpu.CompilerParams(
            dimension_semantics=("parallel",),  # shards across v7x's 2 TCs
        ),
        cost_estimate=cost,
    )(x_p, w_t)

    return out[:B] if b_pad != B else out


def init_params(key):
    # nn.Linear default init: kaiming_uniform -> U(-1/sqrt(fan_in), 1/sqrt(fan_in)).
    bound = 1.0 / (FC_DIM ** 0.5)
    w = jax.random.uniform(
        key, (OUT_DIM, FC_DIM), minval=-bound, maxval=bound, dtype=jnp.float32
    )
    w_t = jnp.asarray(w.T)  # transpose ONCE; kernel consumes [FC_DIM, OUT_DIM]
    return w, w_t


if __name__ == "__main__":
    key = jax.random.PRNGKey(0)
    k_w, k_x = jax.random.split(key)

    w, w_t = init_params(k_w)                    # w: [10, 64] torch layout
    batch = 8
    x = jax.random.normal(k_x, (batch, FC_DIM), dtype=jnp.float32)

    out = mlp_out_linear(x, w_t)                 # [8, 10]
    out = jax.block_until_ready(out)

    # Sanity check against plain-JAX reference of the forward pass.
    ref = x @ w.T
    assert out.shape == (batch, OUT_DIM)
    assert jnp.allclose(out, ref, atol=1e-5, rtol=1e-5)

    # Also exercise a batch that is not a multiple of the tile (padding path).
    x2 = jax.random.normal(jax.random.PRNGKey(1), (13, FC_DIM), dtype=jnp.float32)
    out2 = jax.block_until_ready(mlp_out_linear(x2, w_t))
    assert jnp.allclose(out2, x2 @ w.T, atol=1e-5, rtol=1e-5)

    print("KERNEL_OK")
</pallas_src>

<mosaic_0001>
module attributes {stable_mosaic.version = 11 : i64} {
  func.func @_linear_kernel(%arg0: i32, %arg1: memref<8x64xf32, #tpu.memory_space<vmem>>, %arg2: memref<64x10xf32, #tpu.memory_space<vmem>>, %arg3: memref<8x10xf32, #tpu.memory_space<vmem>>) attributes {dimension_semantics = [#tpu.dimension_semantics<parallel>], iteration_bounds = array<i64: 1>, scalar_prefetch = 0 : i64, scratch_operands = 0 : i64, tpu.core_type = #tpu.core_type<tc>, window_params = [{transform_indices = @transform_0, window_bounds = array<i64: 8, 64>}, {pipeline_mode = #tpu.pipeline_mode<synchronous>, transform_indices = @transform_1, window_bounds = array<i64: 64, 10>}, {transform_indices = @transform_2, window_bounds = array<i64: 8, 10>}]} {
    %c0 = arith.constant 0 : index
    %c0_0 = arith.constant 0 : index
    %0 = vector.load %arg1[%c0, %c0_0] : memref<8x64xf32, #tpu.memory_space<vmem>>, vector<8x64xf32>
    %c0_1 = arith.constant 0 : index
    %c0_2 = arith.constant 0 : index
    %1 = vector.load %arg2[%c0_1, %c0_2] : memref<64x10xf32, #tpu.memory_space<vmem>>, vector<64x10xf32>
    %cst = arith.constant dense<0.000000e+00> : vector<8x10xf32>
    %2 = tpu.matmul %0, %1, %cst {dimension_numbers = #tpu.dot_dimension_numbers<[1], [0], [0], [1], [0, 0, 1, 1], [], []>} : vector<8x64xf32>, vector<64x10xf32>, vector<8x10xf32> -> vector<8x10xf32>
    %c0_3 = arith.constant 0 : index
    %c0_4 = arith.constant 0 : index
    %3 = vector.load %arg3[%c0_3, %c0_4] : memref<8x10xf32, #tpu.memory_space<vmem>>, vector<8x10xf32>
    tpu.vector_store %arg3[%c0_3, %c0_4], %2 {strides = array<i32>} : memref<8x10xf32, #tpu.memory_space<vmem>>, vector<8x10xf32>,
    return
  }
  func.func @transform_0(%arg0: i32) -> (i32, i32) {
    %c0_i32 = arith.constant 0 : i32
    %c0_i32_0 = arith.constant 0 : i32
    return %arg0, %c0_i32 : i32, i32
  }
  func.func @transform_1(%arg0: i32) -> (i32, i32) {
    %c0_i32 = arith.constant 0 : i32
    %c0_i32_0 = arith.constant 0 : i32
    %c0_i32_1 = arith.constant 0 : i32
    return %c0_i32, %c0_i32_0 : i32, i32
  }
  func.func @transform_2(%arg0: i32) -> (i32, i32) {
    %c0_i32 = arith.constant 0 : i32
    %c0_i32_0 = arith.constant 0 : i32
    return %arg0, %c0_i32 : i32, i32
  }
}

</mosaic_0001>

<bundles_post_ra>
// kernel: tpu_custom_call.1
= control target key start
LH: loop header
LB: loop body
LE: loop exit
PB: predicated region body
PF: predicated region fallthrough
CT: control target
= control target key end

     0   :  { %v180_v3 = vmov 0.0|0.0   ;;  %vm181_vm0 = vmmov 0   ;;  %v182_v6 = vmov 0.0   ;;  %s238_s0 = inlined_call_operand.vmem [shape: f32[8,64], index: 0, kind: input, shape index: {}]   ;;  %s239_s1 = inlined_call_operand.vmem [shape: f32[64,10], index: 1, kind: input, shape index: {}]   ;;  %s240_s2 = inlined_call_operand.hbm [shape: f32[8,10], index: 2, kind: output, shape index: {}]  }
   0x1   :  { %v13_v0 = vld [vmem:[%s239_s1] sm:$0xff]  ;;  %v14_v1 = vld [vmem:[%s239_s1 + $0x8] sm:$0xff]  ;;  %v15_v2 = vld [vmem:[%s239_s1 + $0x10] sm:$0xff]  ;;  %140 = vmatprep.subr.bf16.mxu0 %v180_v3  ;;  %137 = vmatprep.mubr.msk.f32.mxu0 %vm181_vm0, %v182_v6 }
   0x2   :  { %v141_v4 = vpack.c.bf16 %v14_v1, %v13_v0  ;;  %v16_v5 = vld [vmem:[%s239_s1 + $0x18] sm:$0xff] }
   0x3   :  { %v144_v7 = vpack.c.bf16 %v16_v5, %v15_v2 }
   0x4   :  { %142 = vmatpush3.bf16.msra.mxu0 %v141_v4 }
   0x5   :  { %7 = vsyncpa [#allocation3], 0  ;;  %143 = vmatprep.subr.bf16.mxu0 %v180_v3  ;;  %v17_v8 = vld [vmem:[%s239_s1 + $0x20] sm:$0xff]  ;;  %v18_v9 = vld [vmem:[%s239_s1 + $0x28] sm:$0xff]  ;;  %vm21_vm1 = vcmask 523264   ;;  %s183_s27 = smov [#allocation2]  }
   0x6   :  { %v147_v10 = vpack.c.bf16 %v18_v9, %v17_v8  ;;  %v19_v11 = vld [vmem:[%s239_s1 + $0x30] sm:$0xff]  ;;  %v20_v12 = vld [vmem:[%s239_s1 + $0x38] sm:$0xff]  ;;  %v12_v14 = vld [vmem:[%s238_s0] sm:$0xff]  ;;  %s103_s28 = sshll.u32 %s183_s27, 4  ;;  %vm95_vm2 = vcmask 80896   ;;  %s104_s28 = int_to_ptr.vmem [resolvable:$true] %s103_s28 }
   0x7   :  { %v150_v13 = vpack.c.bf16 %v20_v12, %v19_v11  ;;  %s156_s29 = scalar_lea.vmem %s104_s28, 128  ;;  %p161_p1 = scmp.lt.s32.totalorder %s104_s28, %s104_s28 }
   0x8   :  { %145 = vmatpush3.bf16.msra.mxu0 %v144_v7  ;;  %p157_p0 = scmp.ne.s32.totalorder %s104_s28, %s156_s29  ;;  %p162_p2 = scmp.lt.s32.totalorder %s156_s29, %s156_s29 }
   0x9   :  { %146 = vmatprep.subr.bf16.mxu0 %v180_v3 }
   0xa   :  { %p163_p3 = por %p162_p2, %p161_p1 }
   0xc   :  { %148 = vmatpush3.bf16.msra.mxu0 %v147_v10  ;;  %p164_p4 = pnand %p163_p3, %p157_p0 }
   0xd   :  { %149 = vmatprep.subr.bf16.mxu0 %v180_v3 }
  0x10   :  { %151 = vmatpush3.bf16.msra.mxu0 %v150_v13 }
  0x13   :  { %138 = vmatmul.mubr.msk.f32.vlgmr.msra.gmra.mrb[0].mxu0 %vm21_vm1, %v12_v14 }
  0xe6   :  { %v91_v15 = vpop.f32.mrb[0].mxu0 }
  0xe7   :  { %96 = vst.msk [vmem:[#allocation2] sm:$0xff] %vm95_vm2, %v91_v15  ;;  %v139_v16 = vpop.f32.mrb[1].mxu0 }
  0xe8   :  { %167 = shalt.err (!%p164_p4)
}
  0xe9   :  { %s168_s0 = scalar_lea.hbm %s240_s2, 128 }
  0xea   :  { %p169_p5 = scmp.ne.s32.totalorder %s240_s2, %s168_s0  ;;  %p172_p6 = scmp.lt.u32.totalorder %s168_s0, %s240_s2 }
  0xec   :  { %p174_p7 = pnand %p172_p6, %p169_p5 }
  0xee   :  { %177 = shalt.err (!%p174_p7)
}
  0xef   :  { %106 = dma.vmem_to_hbm [thread:$0]  %s104_s28, 128, %s240_s2, [#allocation3]  }
  0xf0   :  { %178 = dma.done.wait [#allocation3], 128  }
  0xf1   :  { %179 = vsyncadd [#allocation3], 4294967168 }
  0xf2   :  { %110 = vsyncpa [#allocation3], 1 }

</bundles_post_ra>
